<compile_context>
chip_gen: v6e
topology: v6e:2x2x1
jax: 0.10.0
libtpu: 0.0.40
codegen_flags: <defaults>
</compile_context>

<pallas_src>
import functools

import jax
import jax.numpy as jnp
from jax.experimental import pallas as pl
from jax.experimental.pallas import tpu as pltpu


def _simple_gate_kernel(x_ref, w_ref, b_ref, flow_ref, out_ref, *, TH, W, nTH):
    # x_ref    : (1, Cin, L)     L = (H+2)*W + 2 ; whole padded feature, resident per batch
    # w_ref    : (Cout, 9*Cin)   column index = (dy*3+dx)*Cin + ci
    # b_ref    : (Cout, 1)       f32 bias
    # flow_ref : (1, Cout, TH*W)
    # out_ref  : (1, Cout, TH*W)
    Cin = x_ref.shape[1]
    Cout = out_ref.shape[1]
    THW = TH * W
    L_tile = (TH + 2) * W + 2

    # Halo'd window of this H-tile.  i*THW is a multiple of 128 whenever nTH > 1
    # (tile selection enforces THW % 128 == 0 in that case), and i == 0 when nTH == 1.
    if nTH == 1:
        win = x_ref[0]                                        # (Cin, L) == (Cin, L_tile)
    else:
        i = pl.program_id(1)
        start = pl.multiple_of(i * THW, 128)
        win = x_ref[0, :, pl.ds(start, L_tile)]               # (Cin, L_tile)

    # (1, THW) masks reproducing the conv's left/right zero padding (broadcast in where).
    w_pos = jax.lax.broadcasted_iota(jnp.int32, (1, THW), 1) % W
    keep_left = w_pos > 0
    keep_right = w_pos < (W - 1)
    zero = jnp.zeros((), win.dtype)

    # 3x3 conv = 9 small-K MXU matmuls accumulated in f32; bias folded into the init.
    acc = jnp.broadcast_to(b_ref[...], (Cout, THW)).astype(jnp.float32)
    for dy in range(3):
        for dx in range(3):
            s = dy * W + dx
            slab = win[:, s:s + THW]                          # (Cin, THW) static slice
            if dx == 0:
                slab = jnp.where(keep_left, slab, zero)
            elif dx == 2:
                slab = jnp.where(keep_right, slab, zero)
            tap = dy * 3 + dx
            acc = acc + jnp.dot(w_ref[:, tap * Cin:(tap + 1) * Cin], slab,
                                preferred_element_type=jnp.float32)

    gate = jax.nn.sigmoid(acc)                                # (Cout, THW) f32
    out_ref[0] = (flow_ref[0] * gate).astype(out_ref.dtype)


def _vmem_capacity_bytes():
    try:
        cap = int(pltpu.get_tpu_info().vmem_capacity_bytes)
        if cap > 0:
            return cap
    except Exception:
        pass
    return 64 << 20   # conservative fallback: v7x per-TensorCore VMEM


def _choose_tile_h(N, H, W, budget_bytes, footprint):
    """Largest H-tile whose TRUE per-step footprint fits the budget and whose flow/out
    block stays lane-legal (TH*W % 128 == 0 or TH == H)."""
    cands = [th for th in range(1, H + 1)
             if H % th == 0 and ((th * W) % 128 == 0 or th == H)]
    fitting = [th for th in cands if footprint(th) <= budget_bytes]
    pool = fitting if fitting else [min(cands)]
    best = max(pool)
    # v7x has 2 TensorCores: with N == 1 make sure the grid has >= 2 steps, but only if
    # the smaller tile stays lane-dense enough; on single-TC parts the extra step is cheap.
    if N == 1 and H // best < 2:
        multi = [th for th in pool if H // th >= 2 and th * W >= 1024]
        if multi:
            best = max(multi)
    return best


def simple_gate(feature_origin, flow, weight_oihw, bias):
    """SimpleGate forward: flow * sigmoid(conv3x3(feature_origin) + bias).

    feature_origin: (N, Cin, H, W); flow: (N, Cout, H, W);
    weight: (Cout, Cin, 3, 3); bias: (Cout,).  Returns (N, Cout, H, W) in flow.dtype.
    """
    N, Cin, H, W = feature_origin.shape
    Cout = flow.shape[1]
    assert flow.shape == (N, Cout, H, W)
    assert weight_oihw.shape == (Cout, Cin, 3, 3)

    x_isz = jnp.dtype(feature_origin.dtype).itemsize
    f_isz = jnp.dtype(flow.dtype).itemsize
    w_bytes = Cout * 9 * Cin * jnp.dtype(weight_oihw.dtype).itemsize + Cout * 4
    L = (H + 2) * W + 2

    def footprint(th):
        # True per-step VMEM: resident padded feature (buffered), double-buffered
        # flow + out blocks, in-kernel window + f32 acc/gate temporaries, weights.
        thw = th * W
        x_resident = 2 * Cin * L * x_isz
        io_blocks = 2 * Cout * thw * (2 * f_isz)
        temps = Cin * ((th + 2) * W + 2) * max(x_isz, 4) + 2 * Cout * thw * 4
        return x_resident + io_blocks + temps + 2 * w_bytes

    cap = _vmem_capacity_bytes()
    TH = _choose_tile_h(N, H, W, int(cap * 0.55), footprint)
    nTH = H // TH
    THW = TH * W

    # ---- input prep: ONE cheap pad of the small Cin tensor; flow/out: free reshapes ----
    # (W+1, W+1) lane pad of the contiguous (H*W) axis == 1-row zero halo in H plus the
    # +/-1 column margin needed by the dx taps.
    # TODO(synk): for features too large to keep resident per batch in VMEM, switch x to
    # memory_space=pl.ANY + manual halo-window make_async_copy.
    x_pad = jnp.pad(feature_origin.reshape(N, Cin, H * W),
                    ((0, 0), (0, 0), (W + 1, W + 1)))          # (N, Cin, L)
    # Weight as (Cout, 9*Cin) with column index (dy*3+dx)*Cin + ci; bias as f32 column.
    w_t = jnp.transpose(weight_oihw, (0, 2, 3, 1)).reshape(Cout, 9 * Cin)
    b_col = bias.astype(jnp.float32).reshape(Cout, 1)
    flow_flat = flow.reshape(N, Cout, H * W)

    est = footprint(TH) + (1 << 20)
    vmem_limit = min(max(int(1.25 * est), 8 << 20), int(cap * 0.75))

    kernel = functools.partial(_simple_gate_kernel, TH=TH, W=W, nTH=nTH)
    out_flat = pl.pallas_call(
        kernel,
        out_shape=jax.ShapeDtypeStruct((N, Cout, H * W), flow.dtype),
        grid_spec=pltpu.PrefetchScalarGridSpec(
            num_scalar_prefetch=0,
            grid=(N, nTH),
            in_specs=[
                pl.BlockSpec((1, Cin, L), lambda n, i: (n, 0, 0)),     # resident across i
                pl.BlockSpec((Cout, 9 * Cin), lambda n, i: (0, 0)),
                pl.BlockSpec((Cout, 1), lambda n, i: (0, 0)),
                pl.BlockSpec((1, Cout, THW), lambda n, i: (n, 0, i)),
            ],
            out_specs=pl.BlockSpec((1, Cout, THW), lambda n, i: (n, 0, i)),
        ),
        compiler_params=pltpu.CompilerParams(
            dimension_semantics=("parallel", "parallel"),
            vmem_limit_bytes=vmem_limit,
        ),
    )(x_pad, w_t, b_col, flow_flat)

    return out_flat.reshape(N, Cout, H, W)


def _reference(feature_origin, flow, weight_oihw, bias):
    # Pure-JAX reference (NCHW conv) for the correctness check.
    conv = jax.lax.conv_general_dilated(
        feature_origin.astype(jnp.float32),
        weight_oihw.astype(jnp.float32),
        window_strides=(1, 1),
        padding=((1, 1), (1, 1)),
        dimension_numbers=("NCHW", "OIHW", "NCHW"),
    ) + bias.astype(jnp.float32)[None, :, None, None]
    gate = jax.nn.sigmoid(conv)
    return flow.astype(jnp.float32) * gate


if __name__ == "__main__":
    N, Cin, Cout, H, W = 2, 4, 8, 16, 16

    key = jax.random.PRNGKey(0)
    k1, k2, k3, k4 = jax.random.split(key, 4)

    feature_origin = jax.random.normal(k1, (N, Cin, H, W), dtype=jnp.float32)
    flow = jax.random.normal(k2, (N, Cout, H, W), dtype=jnp.float32)
    # Deterministic synthetic Conv2d(inplane=Cin, outplane=Cout, 3, 1, 1) params.
    weight = jax.random.normal(k3, (Cout, Cin, 3, 3), dtype=jnp.float32) * 0.1
    bias = jax.random.normal(k4, (Cout,), dtype=jnp.float32) * 0.1

    out = simple_gate(feature_origin, flow, weight, bias)
    out = jax.block_until_ready(out)

    ref = _reference(feature_origin, flow, weight, bias)
    assert out.shape == (N, Cout, H, W)
    assert jnp.allclose(out, ref, atol=1e-4, rtol=1e-4), "mismatch vs reference"

    print("KERNEL_OK")
</pallas_src>

<mosaic_0001>
module attributes {stable_mosaic.version = 11 : i64} {
  func.func @_simple_gate_kernel(%arg0: i32, %arg1: i32, %arg2: memref<1x4x290xf32, #tpu.memory_space<vmem>>, %arg3: memref<8x36xf32, #tpu.memory_space<vmem>>, %arg4: memref<8x1xf32, #tpu.memory_space<vmem>>, %arg5: memref<1x8x256xf32, #tpu.memory_space<vmem>>, %arg6: memref<1x8x256xf32, #tpu.memory_space<vmem>>) attributes {dimension_semantics = [#tpu.dimension_semantics<parallel>, #tpu.dimension_semantics<parallel>], iteration_bounds = array<i64: 2, 1>, scalar_prefetch = 0 : i64, scratch_operands = 0 : i64, tpu.core_type = #tpu.core_type<tc>, window_params = [{transform_indices = @transform_0, window_bounds = array<i64: 1, 4, 290>}, {pipeline_mode = #tpu.pipeline_mode<synchronous>, transform_indices = @transform_1, window_bounds = array<i64: 8, 36>}, {pipeline_mode = #tpu.pipeline_mode<synchronous>, transform_indices = @transform_2, window_bounds = array<i64: 8, 1>}, {transform_indices = @transform_3, window_bounds = array<i64: 1, 8, 256>}, {transform_indices = @transform_4, window_bounds = array<i64: 1, 8, 256>}]} {
    %c0 = arith.constant 0 : index
    %c0_0 = arith.constant 0 : index
    %c0_1 = arith.constant 0 : index
    %0 = vector.load %arg2[%c0, %c0_0, %c0_1] : memref<1x4x290xf32, #tpu.memory_space<vmem>>, vector<1x4x290xf32>
    %1 = vector.shape_cast %0 : vector<1x4x290xf32> to vector<4x290xf32>
    %2 = tpu.iota {dimensions = array<i32: 1>} : vector<1x256xi32>
    %c16_i32 = arith.constant 16 : i32
    %c0_i32 = arith.constant 0 : i32
    %3 = arith.cmpi eq, %c16_i32, %c0_i32 : i32
    %c1_i32 = arith.constant 1 : i32
    %4 = arith.select %3, %c1_i32, %c16_i32 : i32
    %5 = vector.broadcast %4 : i32 to vector<1x256xi32>
    %6 = arith.remsi %2, %5 : vector<1x256xi32>
    %c0_i32_2 = arith.constant 0 : i32
    %7 = vector.broadcast %c0_i32_2 : i32 to vector<1x256xi32>
    %8 = arith.cmpi ne, %6, %7 : vector<1x256xi32>
    %c0_i32_3 = arith.constant 0 : i32
    %9 = vector.broadcast %c0_i32_3 : i32 to vector<1x256xi32>
    %10 = arith.cmpi slt, %6, %9 : vector<1x256xi32>
    %c0_i32_4 = arith.constant 0 : i32
    %11 = arith.cmpi slt, %4, %c0_i32_4 : i32
    %12 = vector.broadcast %11 : i1 to vector<1x256xi1>
    %13 = vector.broadcast %12 : vector<1x256xi1> to vector<1x256xi1>
    %14 = arith.xori %10, %13 : vector<1x256xi1>
    %15 = arith.andi %14, %8 : vector<1x256xi1>
    %16 = vector.broadcast %4 : i32 to vector<1x256xi32>
    %17 = arith.addi %6, %16 : vector<1x256xi32>
    %18 = arith.select %15, %17, %6 : vector<1x256xi1>, vector<1x256xi32>
    %c0_i32_5 = arith.constant 0 : i32
    %19 = vector.broadcast %c0_i32_5 : i32 to vector<1x256xi32>
    %20 = arith.cmpi sgt, %18, %19 : vector<1x256xi32>
    %c15_i32 = arith.constant 15 : i32
    %21 = vector.broadcast %c15_i32 : i32 to vector<1x256xi32>
    %22 = arith.cmpi slt, %18, %21 : vector<1x256xi32>
    %c0_6 = arith.constant 0 : index
    %c0_7 = arith.constant 0 : index
    %23 = vector.load %arg4[%c0_6, %c0_7] : memref<8x1xf32, #tpu.memory_space<vmem>>, vector<8x1xf32>
    %24 = vector.shape_cast %23 : vector<8x1xf32> to vector<8x1xf32>
    %25 = vector.broadcast %24 : vector<8x1xf32> to vector<8x256xf32>
    %26 = vector.extract_strided_slice %1 {offsets = [0, 0], sizes = [4, 256], strides = [1, 1]} : vector<4x290xf32> to vector<4x256xf32>
    %cst = arith.constant 0.000000e+00 : f32
    %27 = vector.shape_cast %20 : vector<1x256xi1> to vector<1x256xi1>
    %28 = vector.broadcast %27 : vector<1x256xi1> to vector<4x256xi1>
    %29 = vector.broadcast %cst : f32 to vector<4x256xf32>
    %30 = arith.select %28, %26, %29 : vector<4x256xi1>, vector<4x256xf32>
    %c0_8 = arith.constant 0 : index
    %c0_9 = arith.constant 0 : index
    %31 = vector.load %arg3[%c0_8, %c0_9] : memref<8x36xf32, #tpu.memory_space<vmem>>, vector<8x4xf32>
    %cst_10 = arith.constant dense<0.000000e+00> : vector<8x256xf32>
    %32 = tpu.matmul %31, %30, %cst_10 {dimension_numbers = #tpu.dot_dimension_numbers<[1], [0], [0], [1], [0, 0, 1, 1], [], []>} : vector<8x4xf32>, vector<4x256xf32>, vector<8x256xf32> -> vector<8x256xf32>
    %33 = arith.addf %25, %32 : vector<8x256xf32>
    %34 = vector.extract_strided_slice %1 {offsets = [0, 1], sizes = [4, 256], strides = [1, 1]} : vector<4x290xf32> to vector<4x256xf32>
    %c0_11 = arith.constant 0 : index
    %c4 = arith.constant 4 : index
    %35 = vector.load %arg3[%c0_11, %c4] : memref<8x36xf32, #tpu.memory_space<vmem>>, vector<8x4xf32>
    %cst_12 = arith.constant dense<0.000000e+00> : vector<8x256xf32>
    %36 = tpu.matmul %35, %34, %cst_12 {dimension_numbers = #tpu.dot_dimension_numbers<[1], [0], [0], [1], [0, 0, 1, 1], [], []>} : vector<8x4xf32>, vector<4x256xf32>, vector<8x256xf32> -> vector<8x256xf32>
    %37 = arith.addf %33, %36 : vector<8x256xf32>
    %38 = vector.extract_strided_slice %1 {offsets = [0, 2], sizes = [4, 256], strides = [1, 1]} : vector<4x290xf32> to vector<4x256xf32>
    %cst_13 = arith.constant 0.000000e+00 : f32
    %39 = vector.shape_cast %22 : vector<1x256xi1> to vector<1x256xi1>
    %40 = vector.broadcast %39 : vector<1x256xi1> to vector<4x256xi1>
    %41 = vector.broadcast %cst_13 : f32 to vector<4x256xf32>
    %42 = arith.select %40, %38, %41 : vector<4x256xi1>, vector<4x256xf32>
    %c0_14 = arith.constant 0 : index
    %c8 = arith.constant 8 : index
    %43 = vector.load %arg3[%c0_14, %c8] : memref<8x36xf32, #tpu.memory_space<vmem>>, vector<8x4xf32>
    %cst_15 = arith.constant dense<0.000000e+00> : vector<8x256xf32>
    %44 = tpu.matmul %43, %42, %cst_15 {dimension_numbers = #tpu.dot_dimension_numbers<[1], [0], [0], [1], [0, 0, 1, 1], [], []>} : vector<8x4xf32>, vector<4x256xf32>, vector<8x256xf32> -> vector<8x256xf32>
    %45 = arith.addf %37, %44 : vector<8x256xf32>
    %46 = vector.extract_strided_slice %1 {offsets = [0, 16], sizes = [4, 256], strides = [1, 1]} : vector<4x290xf32> to vector<4x256xf32>
    %cst_16 = arith.constant 0.000000e+00 : f32
    %47 = vector.shape_cast %20 : vector<1x256xi1> to vector<1x256xi1>
    %48 = vector.broadcast %47 : vector<1x256xi1> to vector<4x256xi1>
    %49 = vector.broadcast %cst_16 : f32 to vector<4x256xf32>
    %50 = arith.select %48, %46, %49 : vector<4x256xi1>, vector<4x256xf32>
    %c0_17 = arith.constant 0 : index
    %c12 = arith.constant 12 : index
    %51 = vector.load %arg3[%c0_17, %c12] : memref<8x36xf32, #tpu.memory_space<vmem>>, vector<8x4xf32>
    %cst_18 = arith.constant dense<0.000000e+00> : vector<8x256xf32>
    %52 = tpu.matmul %51, %50, %cst_18 {dimension_numbers = #tpu.dot_dimension_numbers<[1], [0], [0], [1], [0, 0, 1, 1], [], []>} : vector<8x4xf32>, vector<4x256xf32>, vector<8x256xf32> -> vector<8x256xf32>
    %53 = arith.addf %45, %52 : vector<8x256xf32>
    %54 = vector.extract_strided_slice %1 {offsets = [0, 17], sizes = [4, 256], strides = [1, 1]} : vector<4x290xf32> to vector<4x256xf32>
    %c0_19 = arith.constant 0 : index
    %c16 = arith.constant 16 : index
    %55 = vector.load %arg3[%c0_19, %c16] : memref<8x36xf32, #tpu.memory_space<vmem>>, vector<8x4xf32>
    %cst_20 = arith.constant dense<0.000000e+00> : vector<8x256xf32>
    %56 = tpu.matmul %55, %54, %cst_20 {dimension_numbers = #tpu.dot_dimension_numbers<[1], [0], [0], [1], [0, 0, 1, 1], [], []>} : vector<8x4xf32>, vector<4x256xf32>, vector<8x256xf32> -> vector<8x256xf32>
    %57 = arith.addf %53, %56 : vector<8x256xf32>
    %58 = vector.extract_strided_slice %1 {offsets = [0, 18], sizes = [4, 256], strides = [1, 1]} : vector<4x290xf32> to vector<4x256xf32>
    %cst_21 = arith.constant 0.000000e+00 : f32
    %59 = vector.shape_cast %22 : vector<1x256xi1> to vector<1x256xi1>
    %60 = vector.broadcast %59 : vector<1x256xi1> to vector<4x256xi1>
    %61 = vector.broadcast %cst_21 : f32 to vector<4x256xf32>
    %62 = arith.select %60, %58, %61 : vector<4x256xi1>, vector<4x256xf32>
    %c0_22 = arith.constant 0 : index
    %c20 = arith.constant 20 : index
    %63 = vector.load %arg3[%c0_22, %c20] : memref<8x36xf32, #tpu.memory_space<vmem>>, vector<8x4xf32>
    %cst_23 = arith.constant dense<0.000000e+00> : vector<8x256xf32>
    %64 = tpu.matmul %63, %62, %cst_23 {dimension_numbers = #tpu.dot_dimension_numbers<[1], [0], [0], [1], [0, 0, 1, 1], [], []>} : vector<8x4xf32>, vector<4x256xf32>, vector<8x256xf32> -> vector<8x256xf32>
    %65 = arith.addf %57, %64 : vector<8x256xf32>
    %66 = vector.extract_strided_slice %1 {offsets = [0, 32], sizes = [4, 256], strides = [1, 1]} : vector<4x290xf32> to vector<4x256xf32>
    %cst_24 = arith.constant 0.000000e+00 : f32
    %67 = vector.shape_cast %20 : vector<1x256xi1> to vector<1x256xi1>
    %68 = vector.broadcast %67 : vector<1x256xi1> to vector<4x256xi1>
    %69 = vector.broadcast %cst_24 : f32 to vector<4x256xf32>
    %70 = arith.select %68, %66, %69 : vector<4x256xi1>, vector<4x256xf32>
    %c0_25 = arith.constant 0 : index
    %c24 = arith.constant 24 : index
    %71 = vector.load %arg3[%c0_25, %c24] : memref<8x36xf32, #tpu.memory_space<vmem>>, vector<8x4xf32>
    %cst_26 = arith.constant dense<0.000000e+00> : vector<8x256xf32>
    %72 = tpu.matmul %71, %70, %cst_26 {dimension_numbers = #tpu.dot_dimension_numbers<[1], [0], [0], [1], [0, 0, 1, 1], [], []>} : vector<8x4xf32>, vector<4x256xf32>, vector<8x256xf32> -> vector<8x256xf32>
    %73 = arith.addf %65, %72 : vector<8x256xf32>
    %74 = vector.extract_strided_slice %1 {offsets = [0, 33], sizes = [4, 256], strides = [1, 1]} : vector<4x290xf32> to vector<4x256xf32>
    %c0_27 = arith.constant 0 : index
    %c28 = arith.constant 28 : index
    %75 = vector.load %arg3[%c0_27, %c28] : memref<8x36xf32, #tpu.memory_space<vmem>>, vector<8x4xf32>
    %cst_28 = arith.constant dense<0.000000e+00> : vector<8x256xf32>
    %76 = tpu.matmul %75, %74, %cst_28 {dimension_numbers = #tpu.dot_dimension_numbers<[1], [0], [0], [1], [0, 0, 1, 1], [], []>} : vector<8x4xf32>, vector<4x256xf32>, vector<8x256xf32> -> vector<8x256xf32>
    %77 = arith.addf %73, %76 : vector<8x256xf32>
    %78 = vector.extract_strided_slice %1 {offsets = [0, 34], sizes = [4, 256], strides = [1, 1]} : vector<4x290xf32> to vector<4x256xf32>
    %cst_29 = arith.constant 0.000000e+00 : f32
    %79 = vector.shape_cast %22 : vector<1x256xi1> to vector<1x256xi1>
    %80 = vector.broadcast %79 : vector<1x256xi1> to vector<4x256xi1>
    %81 = vector.broadcast %cst_29 : f32 to vector<4x256xf32>
    %82 = arith.select %80, %78, %81 : vector<4x256xi1>, vector<4x256xf32>
    %c0_30 = arith.constant 0 : index
    %c32 = arith.constant 32 : index
    %83 = vector.load %arg3[%c0_30, %c32] : memref<8x36xf32, #tpu.memory_space<vmem>>, vector<8x4xf32>
    %cst_31 = arith.constant dense<0.000000e+00> : vector<8x256xf32>
    %84 = tpu.matmul %83, %82, %cst_31 {dimension_numbers = #tpu.dot_dimension_numbers<[1], [0], [0], [1], [0, 0, 1, 1], [], []>} : vector<8x4xf32>, vector<4x256xf32>, vector<8x256xf32> -> vector<8x256xf32>
    %85 = arith.addf %77, %84 : vector<8x256xf32>
    %86 = arith.negf %85 : vector<8x256xf32>
    %87 = math.exp %86 : vector<8x256xf32>
    %cst_32 = arith.constant 1.000000e+00 : f32
    %88 = vector.broadcast %cst_32 : f32 to vector<8x256xf32>
    %89 = arith.addf %88, %87 : vector<8x256xf32>
    %90 = arith.divf %88, %89 : vector<8x256xf32>
    %c0_33 = arith.constant 0 : index
    %c0_34 = arith.constant 0 : index
    %c0_35 = arith.constant 0 : index
    %91 = vector.load %arg5[%c0_33, %c0_34, %c0_35] : memref<1x8x256xf32, #tpu.memory_space<vmem>>, vector<1x8x256xf32>
    %92 = vector.shape_cast %91 : vector<1x8x256xf32> to vector<8x256xf32>
    %93 = arith.mulf %92, %90 : vector<8x256xf32>
    %c0_36 = arith.constant 0 : index
    %c0_37 = arith.constant 0 : index
    %c0_38 = arith.constant 0 : index
    %94 = vector.load %arg6[%c0_36, %c0_37, %c0_38] : memref<1x8x256xf32, #tpu.memory_space<vmem>>, vector<1x8x256xf32>
    %95 = vector.shape_cast %94 : vector<1x8x256xf32> to vector<8x256xf32>
    %96 = vector.shape_cast %93 : vector<8x256xf32> to vector<1x8x256xf32>
    tpu.vector_store %arg6[%c0_36, %c0_37, %c0_38], %96 {strides = array<i32>} : memref<1x8x256xf32, #tpu.memory_space<vmem>>, vector<1x8x256xf32>,
    return
  }
  func.func @transform_0(%arg0: i32, %arg1: i32) -> (i32, i32, i32) {
    %c0_i32 = arith.constant 0 : i32
    %c0_i32_0 = arith.constant 0 : i32
    %c0_i32_1 = arith.constant 0 : i32
    return %arg0, %c0_i32, %c0_i32_0 : i32, i32, i32
  }
  func.func @transform_1(%arg0: i32, %arg1: i32) -> (i32, i32) {
    %c0_i32 = arith.constant 0 : i32
    %c0_i32_0 = arith.constant 0 : i32
    %c0_i32_1 = arith.constant 0 : i32
    return %c0_i32, %c0_i32_0 : i32, i32
  }
  func.func @transform_2(%arg0: i32, %arg1: i32) -> (i32, i32) {
    %c0_i32 = arith.constant 0 : i32
    %c0_i32_0 = arith.constant 0 : i32
    %c0_i32_1 = arith.constant 0 : i32
    return %c0_i32, %c0_i32_0 : i32, i32
  }
  func.func @transform_3(%arg0: i32, %arg1: i32) -> (i32, i32, i32) {
    %c0_i32 = arith.constant 0 : i32
    %c0_i32_0 = arith.constant 0 : i32
    return %arg0, %c0_i32, %arg1 : i32, i32, i32
  }
  func.func @transform_4(%arg0: i32, %arg1: i32) -> (i32, i32, i32) {
    %c0_i32 = arith.constant 0 : i32
    %c0_i32_0 = arith.constant 0 : i32
    return %arg0, %c0_i32, %arg1 : i32, i32, i32
  }
}

</mosaic_0001>

<bundles_post_ra>
// kernel: tpu_custom_call.1
= control target key start
LH: loop header
LB: loop body
LE: loop exit
PB: predicated region body
PF: predicated region fallthrough
CT: control target
= control target key end

     0   :  { %9 = vsyncpa [#allocation3], 0  ;;  %s1908_s0 = inlined_call_operand.hbm [shape: f32[2,4,290], index: 0, kind: input, shape index: {}]   ;;  %s1909_s1 = inlined_call_operand.vmem [shape: f32[8,36], index: 1, kind: input, shape index: {}]   ;;  %s1910_s2 = inlined_call_operand.vmem [shape: f32[8,1], index: 2, kind: input, shape index: {}]   ;;  %s1911_s3 = inlined_call_operand.hbm [shape: f32[2,8,256], index: 3, kind: input, shape index: {}]   ;;  %s1912_s4 = inlined_call_operand.hbm [shape: f32[2,8,256], index: 4, kind: output, shape index: {}]  }
   0x1   :  { %11 = vsyncpa [#allocation3 + $0x1], 0 }
   0x2   :  { %12 = vsyncpa [#allocation6], 0 }
   0x3   :  { %14 = vsyncpa [#allocation6 + $0x1], 0 }
   0x4   :  { %15 = vsyncpa [#allocation4], 0 }
   0x5   :  { %17 = vsyncpa [#allocation4 + $0x1], 0  ;;  %s1641_s15 = smov 0   ;;  %s1643_s16 = smov 0  }
   0x6   :  { %s1645_s17 = smov 0   ;;  %s1647_s18 = smov 0  }
   0x7   :  { %s1649_s19 = smov 0   ;;  %s1651_s20 = smov 0  }
   0x8 LB: > { %s1312_s21 = sadd.s32 4294967295, %s1595_s20   ;;  %s1313_s22 = sadd.s32 4294967294, %s1595_s20   ;;  %s1595_s20 = sphi %s1651_s20, %s23_s20   ;;  %s1591_s19 = sphi %s1649_s19, %s1932_s19   ;;  %s1587_s18 = sphi %s1647_s18, %s1931_s18   ;;  %s1583_s17 = sphi %s1645_s17, %s1930_s17   ;;  %s1579_s16 = sphi %s1643_s16, %s1929_s16   ;;  %s1575_s15 = sphi %s1641_s15, %s1928_s15  }
   0x9   : > { %s35_s23 = sadd.s32 1, %s1591_s19  ;;  %s42_s24 = sadd.s32 1, %s1583_s17 }
   0xa   : > { %p37_p0 = scmp.ge.s32.totalorder %s35_s23, 2  ;;  %p49_p1 = scmp.ne.s32.totalorder %s1583_s17, %s1579_s16 }
   0xb   : > { %p50_p2 = scmp.eq.s32.totalorder %s1595_s20, 0  ;;  %p55_p3 = scmp.ne.s32.totalorder %s1579_s16, %s1575_s15 }
   0xc   : > { %s1934_s23 = smov (%p37_p0, %s35_s23), 0  ;;  %p56_p5 = scmp.eq.s32.totalorder %s1312_s21, 0 }
   0xd   : > { %p1682_p4 = por %p50_p2, %p49_p1  ;;  %s39_s26 = ssub.s32 %s1591_s19, %s1934_s23 }
   0xe   : > { %p151_p6 = scmp.eq.s32.totalorder %s1312_s21, 1  ;;  %p40_p7 = scmp.eq.s32.totalorder %s39_s26, 0 }
   0xf   : > { %p1688_p8 = por %p56_p5, %p55_p3  ;;  %p157_p10 = scmp.eq.s32.totalorder %s1313_s22, 1 }
  0x10   : > { %p1692_p9 = por %p151_p6, %p49_p1  ;;  %p1379_p13 = scmp.lt.s32.totalorder %s1595_s20, 2 }
  0x11   : > { %s1697_s29 = scalar_select %p40_p7, %s1583_s17, %s42_s24  }
  0x12   : > { %p1699_p11 = por %p157_p10, %p55_p3  ;;  %s1706_s5 = sand.u32 1, %s1583_s17  }
  0x13   : > { %s1359_s6 = smul.u32 12, %s1706_s5  ;;  %p1712_p0 = pnand %p1379_p13, %p1682_p4 }
  0x14   : > { %s1360_s7 = smul.u32 192, %s1591_s19  ;;  %p1320_p1 = scmp.ge.s32.totalorder %s1595_s20, 1 }
  0x15   : > { %s187_s12 = scalar_lea.vmem [#allocation2], %s1359_s6  ;;  %s184_s14 = scalar_lea.sflag [#allocation3], %s1706_s5 }
  0x16   : > { %s193_s11 = scalar_lea.hbm %s1908_s0, %s1360_s7  ;;  %s195_s13 = sshll.u32 %s187_s12, 4  ;;  %s196_s13 = int_to_ptr.vmem [resolvable:$true] %s195_s13 }
  0x17   : > { %p1457_p2 = pneg %p1712_p0  ;;  %s1468_s21 = scalar_lea.vmem %s196_s13, 192 }
  0x18   : > { %p1469_p3 = scmp.ne.s32.totalorder %s196_s13, %s1468_s21  ;;  %s1597_s22 = smov [#allocation2]  }
  0x19   : > { %s1473_s24 = sshll.u32 %s1597_s22, 4  ;;  %s1474_s24 = int_to_ptr.vmem [resolvable:$false] %s1473_s24 }
  0x1a   : > { %p1471_p4 = pnand %p1469_p3, %p1457_p2  ;;  %s1475_s25 = scalar_lea.vmem %s1474_s24, 384 }
  0x1b   : > { %p1476_p6 = scmp.lt.s32.totalorder %s196_s13, %s1474_s24  ;;  %p1477_p7 = scmp.lt.s32.totalorder %s1475_s25, %s1468_s21 }
  0x1c   : > { %p1472_p5 = pneg %p1471_p4 }
  0x1d   : > { %p1478_p10 = por %p1477_p7, %p1476_p6 }
  0x1f   : > { %p1479_p13 = pnand %p1478_p10, %p1472_p5 }
  0x21   : > { %1482 = shalt.err (!%p1479_p13)
}
  0x22   : > { %1371 = dma.hbm_to_vmem [thread:$0]  (!%p1712_p0), %s193_s11, 192, %s196_s13, %s184_s14  }
  0x23   : > { %p221_p3 = scmp.lt.s32.totalorder %s1595_s20, 3  ;;  %s1317_s26 = sshll.u32 %s1706_s5, 4 }
  0x24   : > { %s1357_s6 = sshll.u32 %s1591_s19, 8  ;;  %s206_s21 = scalar_lea.vmem [#allocation5], %s1317_s26 }
  0x25   : > { %p1733_p4 = pnand %p1320_p1, %p221_p3  ;;  %s214_s12 = scalar_lea.hbm %s1911_s3, %s1357_s6 }
  0x26   : > { %s216_s22 = sshll.u32 %s206_s21, 4  ;;  %s203_s24 = scalar_lea.sflag [#allocation6], %s1706_s5  ;;  %s217_s22 = int_to_ptr.vmem [resolvable:$true] %s216_s22 }
  0x27   : > { %s1496_s25 = scalar_lea.vmem %s217_s22, 256  ;;  %s1598_s11 = smov [#allocation5]  }
  0x28   : > { %p1497_p5 = scmp.ne.s32.totalorder %s217_s22, %s1496_s25  ;;  %s1501_s13 = sshll.u32 %s1598_s11, 4  ;;  %s1502_s13 = int_to_ptr.vmem [resolvable:$false] %s1501_s13 }
  0x29   : > { %s1503_s14 = scalar_lea.vmem %s1502_s13, 512  ;;  %p1504_p1 = scmp.lt.s32.totalorder %s217_s22, %s1502_s13 }
  0x2a   : > { %p1499_p6 = pnand %p1497_p5, %p1457_p2  ;;  %p1505_p10 = scmp.lt.s32.totalorder %s1503_s14, %s1496_s25 }
  0x2c   : > { %p1500_p7 = pneg %p1499_p6  ;;  %p1506_p13 = por %p1505_p10, %p1504_p1 }
  0x2e   : > { %p1507_p3 = pnand %p1506_p13, %p1500_p7 }
  0x30   : > { %1510 = shalt.err (!%p1507_p3)
}
  0x31   : > { %1374 = dma.hbm_to_vmem [thread:$0]  (!%p1712_p0), %s214_s12, 256, %s217_s22, %s203_s24  }
  0x32   : > { %225 = sbr.rel (%p1733_p4) target bundleno = 483 (0x1e3), region = 36  ;;  %s1749_s5 = sand.u32 (!%p1733_p4), 1, %s1579_s16  }
  0x33   : > { %s1361_s26 = smul.u32 (!%p1733_p4), 12, %s1749_s5  ;;  %s228_s6 = scalar_lea.sflag (!%p1733_p4), [#allocation3], %s1749_s5 }
  0x35   : > { %s231_s9 = scalar_lea.vmem (!%p1733_p4), [#allocation2], %s1361_s26 }
  0x37   : > { %1562 = dma.done.wait (%p1688_p8), %s228_s6, 192  }
  0x38   : > { %1564 = vsyncadd (%p1688_p8), %s228_s6, 4294967104  ;;  %s1321_s8 = sshll.u32 %s1749_s5, 4  ;;  %s237_s7 = scalar_lea.sflag [#allocation6], %s1749_s5 }
  0x39   : > { %s1761_s10 = scalar_lea.vmem [#allocation5], %s1321_s8 }
  0x3a   : > { %1566 = dma.done.wait (%p1688_p8), %s237_s7, 256  }
  0x3b   : > { %1568 = vsyncadd (%p1688_p8), %s237_s7, 4294967040  ;;  %v274_v0 = vlaneseq  ;;  %v1599_v4 = vmov 0.0   ;;  %v273_v6 = vld [vmem:[%s231_s9 + $0x8] sm:$0xf]  ;;  %v272_v7 = vld [vmem:[%s231_s9] sm:$0xff]  ;;  %s1600_s27 = smov 127  }
  0x3c   : > { %396 = vmatprep.mubr.f32.mxu0 %v1599_v4  ;;  %487 = vmatprep.mubr.f32.mxu1 %v1599_v4  ;;  %v316_v9 = vcombine.high %v272_v7, %v272_v7  ;;  %vm325_vm2 = vcmask 1043456   ;;  %vm321_vm3 = vcmask 31744   ;;  %s1601_s12 = smov 126   ;;  %v320_v13 = vld [vmem:[%s1909_s1] sm:$0xff]  ;;  %s1602_s24 = smov 112   ;;  %v1612_v14 = vmov 0  }
  0x3d   : > { %v1767_v1 = vand.u32 127, %v274_v0  ;;  %412 = vrot.lane.b32.xlu0 %v273_v6, %s1600_s27  ;;  %408 = vrot.lane.b32.xlu1 %v272_v7, %s1600_s27  ;;  %s1603_s25 = smov 124   ;;  %s1604_s11 = smov 111   ;;  %v305_v15 = vld [vmem:[%s1910_s2] sm:$0xff]  ;;  %vm506_vm4 = vcmask 1031168   ;;  %vm414_vm5 = vcmask 1039360  }
  0x3e   : > { %s1605_s13 = smov 120   ;;  %s1606_s14 = smov 116   ;;  %1445 = vset.pattern.permute.xlu0 %v1612_v14  ;;  %vm604_vm8 = vcmask 916480   ;;  %vm704_vm9 = vcmask 908288   ;;  %vm792_vm10 = vcmask 900096   ;;  %vm890_vm11 = vcmask 785408  }
  0x3f   : > { %v1770_v2 = vadd.s32 128, %v1767_v1  ;;  %v281_v3 = vand.u32 15, %v1767_v1  ;;  %s1607_s26 = smov 110   ;;  %s1608_s6 = smov 96   ;;  %vm990_vm12 = vcmask 777216   ;;  %vm1078_vm13 = vcmask 769024  }
  0x40   : > { %s1609_s9 = smov 95   ;;  %s1610_s7 = smov 108  }
  0x41   : > { %v288_v5 = vand.u32 15, %v1770_v2  ;;  %vm1778_vm0 = vcmp.gt.s32.totalorder %v281_v3, 0  ;;  %504 = vrot.lane.b32.xlu0 %v273_v6, %s1601_s12  ;;  %500 = vrot.lane.b32.xlu1 %v272_v7, %s1601_s12  ;;  %s1614_s21 = smov 100   ;;  %vm1804_vm6 = vcmp.lt.s32.totalorder %v281_v3, 15 }
  0x42   : > { %v318_v12 = vsel %vm1778_vm0, %v272_v7, 0.0 }
  0x43   : > { %vm1784_vm1 = vcmp.gt.s32.totalorder %v288_v5, 0  ;;  %vm1810_vm7 = vcmp.lt.s32.totalorder %v288_v5, 15 }
  0x44   : > { %v319_v11 = vsel %vm1784_vm1, %v316_v9, 0.0 }
  0x45   : > { %1323 = vmatprep.subr.msk.mxu0 %vm325_vm2, %v319_v11  ;;  %502 = vrot.lane.b32.xlu1 %v316_v9, %s1601_s12  ;;  %s1613_s12 = smov 94  }
  0x46   : > { %1324 = vmatpush1.msk.msra.mxu0 %vm325_vm2, %v318_v12  ;;  %410 = vrot.lane.b32.xlu0 %v316_v9, %s1600_s27  ;;  %s1611_s27 = smov 104  }
  0x47   : > { %1325 = vmatmul.mubr.msk.f32.vlgmr.msra.gmra.mxu0 %vm321_vm3, %v320_v13 }
  0x48   : > { %589 = vmatprep.mubr.f32.mxu0 %v1599_v4 }
  0x49   : > { %600 = vrot.lane.b32.xlu1 %v316_v9, %s1602_s24 }
  0x4a   : > { %405 = vrot.lane.b32.xlu0 %v320_v13, %s1603_s25  ;;  %s1358_s25 = sshll.u32 %s1587_s18, 8  ;;  %s1615_s18 = smov [#allocation7]  }
  0x4d   : > { %598 = vrot.lane.b32.xlu1 %v272_v7, %s1602_s24 }
  0x4e   : > { %602 = vrot.lane.b32.xlu0 %v273_v6, %s1602_s24 }
  0x51   : > { %700 = vrot.lane.b32.xlu1 %v316_v9, %s1604_s11 }
  0x52   : > { %515 = vrot.lane.b32.xlu0 %v320_v13, %s1605_s13 }
  0x55   : > { %613 = vrot.lane.b32.xlu1 %v320_v13, %s1606_s14 }
  0x56   : > { %702 = vrot.lane.b32.xlu0 %v273_v6, %s1604_s11 }
  0x59   : > { %788 = vrot.lane.b32.xlu1 %v316_v9, %s1607_s26 }
  0x5a   : > { %698 = vrot.lane.b32.xlu0 %v272_v7, %s1604_s11  ;;  %s269_s11 = scalar_lea.vmem [#allocation7], %s1321_s8 }
  0x5b   : > { %s1205_s13 = sshll.u32 %s269_s11, 4  ;;  %s1206_s13 = int_to_ptr.vmem [resolvable:$true] %s1205_s13 }
  0x5d   : > { %786 = vrot.lane.b32.xlu1 %v272_v7, %s1607_s26 }
  0x5e   : > { %790 = vrot.lane.b32.xlu0 %v273_v6, %s1607_s26 }
  0x61   : > { %886 = vrot.lane.b32.xlu1 %v316_v9, %s1608_s6 }
  0x62   : > { %696 = vrot.lane.b32.xlu0 %v320_v13, %s1602_s24 }
  0x65   : > { %884 = vrot.lane.b32.xlu1 %v272_v7, %s1608_s6 }
  0x66   : > { %888 = vrot.lane.b32.xlu0 %v273_v6, %s1608_s6 }
  0x69   : > { %986 = vrot.lane.b32.xlu1 %v316_v9, %s1609_s9 }
  0x6a   : > { %801 = vrot.lane.b32.xlu0 %v320_v13, %s1610_s7  ;;  %s1511_s7 = scalar_lea.vmem %s1206_s13, 256 }
  0x6b   : > { %p1512_p8 = scmp.ne.s32.totalorder %s1206_s13, %s1511_s7 }
  0x6d   : > { %899 = vrot.lane.b32.xlu1 %v320_v13, %s1611_s27  ;;  %p1513_p0 = pnand %p1512_p8, %p1692_p9 }
  0x6e   : > { %988 = vrot.lane.b32.xlu0 %v273_v6, %s1609_s9 }
  0x6f   : > { %p1514_p2 = pneg %p1513_p0 }
  0x71   : > { %1074 = vrot.lane.b32.xlu1 %v316_v9, %s1613_s12 }
  0x72   : > { %984 = vrot.lane.b32.xlu0 %v272_v7, %s1609_s9  ;;  %s1189_s9 = scalar_lea.sflag [#allocation4], %s1749_s5 }
  0x75   : > { %1072 = vrot.lane.b32.xlu1 %v272_v7, %s1613_s12 }
  0x76   : > { %1076 = vrot.lane.b32.xlu0 %v273_v6, %s1613_s12 }
  0x79   : > { %1087 = vrot.lane.b32.xlu1 %v320_v13, %s1608_s6  ;;  %s1203_s6 = scalar_lea.hbm %s1912_s4, %s1358_s25 }
  0x7a   : > { %982 = vrot.lane.b32.xlu0 %v320_v13, %s1614_s21 }
  0x7e   : > { %308 = vperm.xlu0 %1445, %v305_v15  }
  0xaf   : > { %v413_v16 = vpop.permute.xlu0 %412  ;;  %v409_v17 = vpop.permute.xlu1 %408 }
  0xb3   : > { %v505_v18 = vpop.permute.xlu0 %504  ;;  %v501_v19 = vpop.permute.xlu1 %500 }
  0xb7   : > { %v503_v22 = vpop.permute.xlu1 %502 }
  0xb8   : > { %v411_v23 = vpop.permute.xlu0 %410  ;;  %v507_v24 = vsel %vm506_vm4, %v501_v19, %v503_v22  ;;  %v508_v25 = vsel %vm506_vm4, %v503_v22, %v505_v18 }
  0xb9   : > { %v416_v26 = vsel %vm414_vm5, %v411_v23, %v413_v16  ;;  %v415_v27 = vsel %vm414_vm5, %v409_v17, %v411_v23  ;;  %v511_v28 = vsel %vm1804_vm6, %v507_v24, 0.0  ;;  %v512_v29 = vsel %vm1810_vm7, %v508_v25, 0.0 }
  0xba   : > { %1326 = vmatprep.subr.msk.mxu1 %vm325_vm2, %v416_v26  ;;  %1329 = vmatprep.subr.msk.mxu0 %vm325_vm2, %v512_v29 }
  0xbb   : > { %1327 = vmatpush1.msk.msra.mxu1 %vm325_vm2, %v415_v27  ;;  %v601_v30 = vpop.permute.xlu1 %600  ;;  %1330 = vmatpush1.msk.msra.mxu0 %vm325_vm2, %v511_v28 }
  0xbc   : > { %v406_v31 = vpop.permute.xlu0 %405 }
  0xbd   : > { %1328 = vmatmul.mubr.msk.f32.vlgmr.msra.gmra.mxu1 %vm321_vm3, %v406_v31 }
  0xbe   : > { %687 = vmatprep.mubr.f32.mxu1 %v1599_v4 }
  0xbf   : > { %v599_v32 = vpop.permute.xlu1 %598 }
  0xc0   : > { %v603_v33 = vpop.permute.xlu0 %602  ;;  %v605_v34 = vsel %vm604_vm8, %v599_v32, %v601_v30 }
  0xc1   : > { %v606_v35 = vsel %vm604_vm8, %v601_v30, %v603_v33  ;;  %v609_v36 = vsel %vm1778_vm0, %v605_v34, 0.0 }
  0xc2   : > { %v610_v37 = vsel %vm1784_vm1, %v606_v35, 0.0 }
  0xc3   : > { %1332 = vmatprep.subr.msk.mxu1 %vm325_vm2, %v610_v37  ;;  %v701_v38 = vpop.permute.xlu1 %700 }
  0xc4   : > { %1333 = vmatpush1.msk.msra.mxu1 %vm325_vm2, %v609_v36  ;;  %v516_v39 = vpop.permute.xlu0 %515 }
  0xc5   : > { %1331 = vmatmul.mubr.msk.f32.vlgmr.msra.gmra.mxu0 %vm321_vm3, %v516_v39 }
  0xc6   : > { %777 = vmatprep.mubr.f32.mxu0 %v1599_v4 }
  0xc7   : > { %v614_v40 = vpop.permute.xlu1 %613 }
  0xc8   : > { %v703_v41 = vpop.permute.xlu0 %702  ;;  %1334 = vmatmul.mubr.msk.f32.vlgmr.msra.gmra.mxu1 %vm321_vm3, %v614_v40 }
  0xc9   : > { %v706_v42 = vsel %vm704_vm9, %v701_v38, %v703_v41  ;;  %875 = vmatprep.mubr.f32.mxu1 %v1599_v4 }
  0xca   : > { %1335 = vmatprep.subr.msk.mxu0 %vm325_vm2, %v706_v42 }
  0xcb   : > { %v789_v43 = vpop.permute.xlu1 %788 }
  0xcc   : > { %v699_v44 = vpop.permute.xlu0 %698 }
  0xcd   : > { %v705_v45 = vsel %vm704_vm9, %v699_v44, %v701_v38 }
  0xce   : > { %1336 = vmatpush1.msk.msra.mxu0 %vm325_vm2, %v705_v45 }
  0xcf   : > { %v787_v46 = vpop.permute.xlu1 %786 }
  0xd0   : > { %v791_v47 = vpop.permute.xlu0 %790  ;;  %v793_v48 = vsel %vm792_vm10, %v787_v46, %v789_v43 }
  0xd1   : > { %v794_v49 = vsel %vm792_vm10, %v789_v43, %v791_v47  ;;  %v797_v50 = vsel %vm1804_vm6, %v793_v48, 0.0 }
  0xd2   : > { %v798_v51 = vsel %vm1810_vm7, %v794_v49, 0.0 }
  0xd3   : > { %1338 = vmatprep.subr.msk.mxu1 %vm325_vm2, %v798_v51  ;;  %v887_v52 = vpop.permute.xlu1 %886 }
  0xd4   : > { %1339 = vmatpush1.msk.msra.mxu1 %vm325_vm2, %v797_v50  ;;  %v697_v53 = vpop.permute.xlu0 %696 }
  0xd5   : > { %1337 = vmatmul.mubr.msk.f32.vlgmr.msra.gmra.mxu0 %vm321_vm3, %v697_v53 }
  0xd6   : > { %973 = vmatprep.mubr.f32.mxu0 %v1599_v4 }
  0xd7   : > { %v885_v54 = vpop.permute.xlu1 %884 }
  0xd8   : > { %v889_v55 = vpop.permute.xlu0 %888  ;;  %v891_v56 = vsel %vm890_vm11, %v885_v54, %v887_v52 }
  0xd9   : > { %v892_v57 = vsel %vm890_vm11, %v887_v52, %v889_v55  ;;  %v895_v58 = vsel %vm1778_vm0, %v891_v56, 0.0  ;;  %v1182_v55 = vld [vmem:[%s1761_s10] sm:$0xff] }
  0xda   : > { %v896_v59 = vsel %vm1784_vm1, %v892_v57, 0.0  ;;  %v1183_v57 = vld [vmem:[%s1761_s10 + $0x8] sm:$0xff]  ;;  %s1515_s10 = sshll.u32 %s1615_s18, 4  ;;  %s1516_s10 = int_to_ptr.vmem [resolvable:$false] %s1515_s10 }
  0xdb   : > { %1341 = vmatprep.subr.msk.mxu0 %vm325_vm2, %v896_v59  ;;  %v987_v60 = vpop.permute.xlu1 %986  ;;  %s1517_s8 = scalar_lea.vmem %s1516_s10, 512  ;;  %p1518_p4 = scmp.lt.s32.totalorder %s1206_s13, %s1516_s10 }
  0xdc   : > { %v802_v61 = vpop.permute.xlu0 %801  ;;  %1342 = vmatpush1.msk.msra.mxu0 %vm325_vm2, %v895_v58  ;;  %p1519_p5 = scmp.lt.s32.totalorder %s1517_s8, %s1511_s7 }
  0xdd   : > { %1340 = vmatmul.mubr.msk.f32.vlgmr.msra.gmra.mxu1 %vm321_vm3, %v802_v61 }
  0xde   : > { %1063 = vmatprep.mubr.f32.mxu1 %v1599_v4  ;;  %p1520_p6 = por %p1519_p5, %p1518_p4 }
  0xdf   : > { %v900_v62 = vpop.permute.xlu1 %899 }
  0xe0   : > { %v989_v63 = vpop.permute.xlu0 %988  ;;  %1343 = vmatmul.mubr.msk.f32.vlgmr.msra.gmra.mxu0 %vm321_vm3, %v900_v62  ;;  %p1521_p7 = pnand %p1520_p6, %p1514_p2 }
  0xe1   : > { %v992_v0 = vsel %vm990_vm12, %v987_v60, %v989_v63  ;;  %1161 = vmatprep.mubr.f32.mxu0 %v1599_v4 }
  0xe2   : > { %1344 = vmatprep.subr.msk.mxu1 %vm325_vm2, %v992_v0 }
  0xe3   : > { %v1075_v1 = vpop.permute.xlu1 %1074 }
  0xe4   : > { %v985_v2 = vpop.permute.xlu0 %984 }
  0xe5   : > { %v991_v3 = vsel %vm990_vm12, %v985_v2, %v987_v60 }
  0xe6   : > { %1345 = vmatpush1.msk.msra.mxu1 %vm325_vm2, %v991_v3 }
  0xe7   : > { %v1073_v5 = vpop.permute.xlu1 %1072 }
  0xe8   : > { %v1077_v6 = vpop.permute.xlu0 %1076  ;;  %v1079_v7 = vsel %vm1078_vm13, %v1073_v5, %v1075_v1 }
  0xe9   : > { %v1080_v8 = vsel %vm1078_vm13, %v1075_v1, %v1077_v6  ;;  %v1083_v9 = vsel %vm1804_vm6, %v1079_v7, 0.0 }
  0xea   : > { %v1084_v10 = vsel %vm1810_vm7, %v1080_v8, 0.0 }
  0xeb   : > { %1347 = vmatprep.subr.msk.mxu0 %vm325_vm2, %v1084_v10  ;;  %v1088_v4 = vpop.permute.xlu1 %1087 }
  0xec   : > { %v983_v11 = vpop.permute.xlu0 %982  ;;  %1348 = vmatpush1.msk.msra.mxu0 %vm325_vm2, %v1083_v9 }
  0xed   : > { %1346 = vmatmul.mubr.msk.f32.vlgmr.msra.gmra.mxu1 %vm321_vm3, %v983_v11  ;;  %1349 = vmatmul.mubr.msk.f32.vlgmr.msra.gmra.mxu0 %vm321_vm3, %v1088_v4 }
  0xf9   : > { %v309_v15 = vpop.permute.xlu0 %308 }
 0x107   : > { %v398_v12 = vpop.f32.mrf.mxu0 }
 0x108   : > { %v403_v18 = vadd.f32 %v398_v12, %v309_v15 }
 0x109   : > { %v400_v13 = vpop.f32.mrf.mxu0 }
 0x10a   : > { %v404_v21 = vadd.f32 %v400_v13, %v309_v15 }
 0x17d   : > { %v489_v14 = vpop.f32.mrf.mxu1 }
 0x17e   : > { %v494_v23 = vadd.f32 %v489_v14, %v403_v18 }
 0x17f   : > { %v491_v17 = vpop.f32.mrf.mxu1 }
 0x180   : > { %v495_v25 = vadd.f32 %v491_v17, %v404_v21 }
 0x185   : > { %v591_v16 = vpop.f32.mrf.mxu0 }
 0x186   : > { %v596_v26 = vadd.f32 %v591_v16, %v494_v23 }
 0x187   : > { %v593_v19 = vpop.f32.mrf.mxu0 }
 0x188   : > { %v689_v20 = vpop.f32.mrf.mxu1  ;;  %v597_v29 = vadd.f32 %v593_v19, %v495_v25 }
 0x189   : > { %v694_v30 = vadd.f32 %v689_v20, %v596_v26 }
 0x18a   : > { %v691_v24 = vpop.f32.mrf.mxu1 }
 0x18b   : > { %v695_v32 = vadd.f32 %v691_v24, %v597_v29 }
 0x195   : > { %v779_v22 = vpop.f32.mrf.mxu0 }
 0x196   : > { %v784_v33 = vadd.f32 %v779_v22, %v694_v30 }
 0x197   : > { %v781_v27 = vpop.f32.mrf.mxu0 }
 0x198   : > { %v785_v35 = vadd.f32 %v781_v27, %v695_v32 }
 0x19d   : > { %v877_v28 = vpop.f32.mrf.mxu1 }
 0x19e   : > { %v882_v36 = vadd.f32 %v877_v28, %v784_v33 }
 0x19f   : > { %v879_v34 = vpop.f32.mrf.mxu1 }
 0x1a0   : > { %v975_v31 = vpop.f32.mrf.mxu0  ;;  %v883_v38 = vadd.f32 %v879_v34, %v785_v35 }
 0x1a1   : > { %v980_v39 = vadd.f32 %v975_v31, %v882_v36 }
 0x1a2   : > { %v977_v37 = vpop.f32.mrf.mxu0 }
 0x1a3   : > { %v981_v42 = vadd.f32 %v977_v37, %v883_v38 }
 0x1ad   : > { %v1065_v40 = vpop.f32.mrf.mxu1  ;;  %v1163_v41 = vpop.f32.mrf.mxu0 }
 0x1ae   : > { %v1070_v43 = vadd.f32 %v1065_v40, %v980_v39 }
 0x1af   : > { %v1067_v44 = vpop.f32.mrf.mxu1  ;;  %v1165_v47 = vpop.f32.mrf.mxu0 }
 0x1b0   : > { %v1168_v45 = vadd.f32 %v1163_v41, %v1070_v43  ;;  %v1071_v46 = vadd.f32 %v1067_v44, %v981_v42 }
 0x1b2   : > { %v1350_v48 = vmul.f32 -1.442695, %v1168_v45  ;;  %v1169_v49 = vadd.f32 %v1165_v47, %v1071_v46 }
 0x1b4   : > { %1447 = vpow2.f32 %v1350_v48  ;;  %v1351_v50 = vmul.f32 -1.442695, %v1169_v49 }
 0x1b6   : > { %1449 = vpow2.f32 %v1351_v50 }
 0x1c1   : > { %v1448_v51 = vpop.eup %1447 }
 0x1c2   : > { %v1176_v52 = vadd.f32 1.0, %v1448_v51 }
 0x1c3   : > { %v1450_v53 = vpop.eup %1449 }
 0x1c4   : > { %1451 = vrcp.f32 %v1176_v52  ;;  %v1177_v54 = vadd.f32 1.0, %v1450_v53 }
 0x1c6   : > { %1453 = vrcp.f32 %v1177_v54 }
 0x1d1   : > { %v1452_v56 = vpop.eup %1451 }
 0x1d2   : > { %v1184_v58 = vmul.f32 %v1452_v56, %v1182_v55 }
 0x1d3   : > { %v1454_v59 = vpop.eup %1453 }
 0x1d4   : > { %v1185_v60 = vmul.f32 %v1454_v59, %v1183_v57  ;;  %1186 = vst [vmem:[%s269_s11] sm:$0xff] %v1184_v58 }
 0x1d6   : > { %1187 = vst [vmem:[%s269_s11 + $0x8] sm:$0xff] %v1185_v60 }
 0x1d7   : > { %1524 = shalt.err (!%p1521_p7)
}
 0x1d8   : > { %s1525_s27 = scalar_lea.hbm %s1203_s6, 256  ;;  %s1529_s21 = scalar_lea.hbm %s1912_s4, 512 }
 0x1d9   : > { %p1526_p1 = scmp.ne.s32.totalorder %s1203_s6, %s1525_s27  ;;  %p1530_p3 = scmp.lt.s32.totalorder %s1203_s6, %s1912_s4 }
 0x1da   : > { %p1531_p8 = scmp.lt.s32.totalorder %s1529_s21, %s1525_s27 }
 0x1db   : > { %p1527_p10 = pnand %p1526_p1, %p1692_p9 }
 0x1dc   : > { %p1532_p0 = por %p1531_p8, %p1530_p3 }
 0x1dd   : > { %p1528_p13 = pneg %p1527_p10 }
 0x1df   : > { %p1533_p12 = pnand %p1532_p0, %p1528_p13 }
 0x1e1   : > { %1536 = shalt.err (!%p1533_p12)
}
 0x1e2   : > { %1366 = dma.vmem_to_hbm [thread:$0]  (%p1692_p9), %s1206_s13, 256, %s1203_s6, %s1189_s9  }
 0x1e3 PF: > { %s1217_s25 = sand.u32 1, %s1575_s15   ;;  %p1927_p2 = scmp.ge.s32.totalorder %s1595_s20, 2 }
 0x1e4   : > { %s1218_s11 = scalar_lea.sflag [#allocation4], %s1217_s25 }
 0x1e5   : > { %p1376_p4 = pnand %p1927_p2, %p1699_p11 }
 0x1e7   : > { %p1377_p5 = pneg %p1376_p4 }
 0x1e9   : > { %1570 = dma.done.wait (%p1377_p5), %s1218_s11, 256  }
 0x1ea   : > { %1572 = vsyncadd (%p1377_p5), %s1218_s11, 4294967040  ;;  %s23_s20 = sadd.s32 1, %s1595_s20   ;;  %s1928_s15 = smov %s1579_s16 }
 0x1eb   : > { %p20_p6 = scmp.ge.s32.totalorder %s23_s20, 4   ;;  %s1929_s16 = smov %s1583_s17 }
 0x1ec   : > { %s1930_s17 = smov %s1697_s29  ;;  %s1931_s18 = smov %s1591_s19 }
 0x1ed   : > { %s1932_s19 = smov %s1934_s23  ;;  %22 = sbr.rel (!%p20_p6) target bundleno = 8 (0x8), region = 94 }
 0x1f2   :  { %1223 = vsyncpa [#allocation3], 1 }
 0x1f3   :  { %1225 = vsyncpa [#allocation3 + $0x1], 1 }
 0x1f4   :  { %1226 = vsyncpa [#allocation6], 1 }
 0x1f5   :  { %1228 = vsyncpa [#allocation6 + $0x1], 1 }
 0x1f6   :  { %1229 = vsyncpa [#allocation4], 1 }
 0x1f7   :  { %1231 = vsyncpa [#allocation4 + $0x1], 1 }

</bundles_post_ra>
